<compile_context>
chip_gen: v5e
topology: v5e:2x2
jax: 0.10.0
libtpu: 0.0.40
codegen_flags: <defaults>
</compile_context>

<pallas_src>
from functools import partial

import jax
import jax.numpy as jnp
from jax.experimental import pallas as pl
from jax.experimental.pallas import tpu as pltpu

# --- fixed architecture constants (stand-in for `ct`) ---
NUM_LAYERS = 3
NUM_NODES = 32     # N
HALF = 64          # actor occupies lanes 0:64, critic occupies lanes 64:128
SLAB = 128         # fused lane width of every hidden layer and of the output
# ACTIVATION = 'relu', LAST_ACTIVATION = 'tanh'


def _round_up(x, m):
    return (x + m - 1) // m * m


# ----------------------------------------------------------------------------
# Kernel: 4 fused 128-wide matmuls, one full-width store
# ----------------------------------------------------------------------------
def _make_kernel(compute_dtype):
    def kernel(x_ref, w0_ref, w1_ref, w2_ref, w3_ref, b_ref, out_ref):
        # bias / slope / mask rows (f32, sublane slices of an (8,128) slab)
        b0 = b_ref[0:1, :]
        b1 = b_ref[1:2, :]
        b2 = b_ref[2:3, :]
        b3 = b_ref[3:4, :]
        s0 = b_ref[4:5, :]   # slope where h<=0: 0 on actor half (ReLU), a0 on critic (PReLU)
        s1 = b_ref[5:6, :]
        s2 = b_ref[6:7, :]   # 1 on actor half (identity pre-tanh), a2 on critic half
        mask = b_ref[7:8, :]  # 1 on lanes 0:64, 0 on lanes 64:128

        x = x_ref[...].astype(compute_dtype)                       # (TB, Fp) -> bf16

        # fused layer 0: x @ [a_w0 | c_w0]   (single-pass bf16 MXU, f32 accumulate)
        h = jnp.dot(x, w0_ref[...], preferred_element_type=jnp.float32) + b0
        h = jnp.where(h > 0, h, s0 * h)
        # fused layer 1: blockdiag(a_w1, c_w1)
        h = jnp.dot(h.astype(compute_dtype), w1_ref[...],
                    preferred_element_type=jnp.float32) + b1
        h = jnp.where(h > 0, h, s1 * h)
        # fused layer 2: actor head pre-tanh (lanes 0:OUT) | critic hidden (lanes 64:96)
        h = jnp.dot(h.astype(compute_dtype), w2_ref[...],
                    preferred_element_type=jnp.float32) + b2
        h = jnp.where(h > 0, h, s2 * h)
        # critic head: zero-padded (128,128) W3 writes value directly into lane 64
        v = jnp.dot(h.astype(compute_dtype), w3_ref[...],
                    preferred_element_type=jnp.float32) + b3

        # single lane-dense unmasked store: mu at lanes 0:OUT, value at lane 64
        out_ref[...] = (mask * jnp.tanh(h) + v).astype(out_ref.dtype)

    return kernel


# ----------------------------------------------------------------------------
# Parameter packing — call ONCE, reuse the result for every forward call
# ----------------------------------------------------------------------------
def pack_params(p, num_inputs, *, weight_dtype=jnp.bfloat16):
    N = NUM_NODES
    OUT = p["a_w2"].shape[1]
    assert OUT <= HALF, f"num_outputs={OUT} must be <= {HALF} for the fused 128-lane slab"
    F = num_inputs
    Fp = _round_up(F, 8)
    f32 = jnp.float32

    W0 = jnp.zeros((Fp, SLAB), f32)
    W0 = W0.at[:F, 0:N].set(p["a_w0"]).at[:F, HALF:HALF + N].set(p["c_w0"])

    W1 = jnp.zeros((SLAB, SLAB), f32)
    W1 = W1.at[0:N, 0:N].set(p["a_w1"]).at[HALF:HALF + N, HALF:HALF + N].set(p["c_w1"])

    W2 = jnp.zeros((SLAB, SLAB), f32)
    W2 = W2.at[0:N, 0:OUT].set(p["a_w2"]).at[HALF:HALF + N, HALF:HALF + N].set(p["c_w2"])

    W3 = jnp.zeros((SLAB, SLAB), f32)
    W3 = W3.at[HALF:HALF + N, HALF:HALF + 1].set(p["c_w3"])   # value lands in lane 64

    def row(*pairs):
        r = jnp.zeros((1, SLAB), f32)
        for start, vals in pairs:
            r = r.at[:, start:start + vals.shape[-1]].set(vals)
        return r

    b0 = row((0, p["a_b0"]), (HALF, p["c_b0"]))
    b1 = row((0, p["a_b1"]), (HALF, p["c_b1"]))
    b2 = row((0, p["a_b2"]), (HALF, p["c_b2"]))
    b3 = row((HALF, p["c_b3"]))

    a0, a1, a2 = p["prelu"][0], p["prelu"][1], p["prelu"][2]
    s0 = jnp.zeros((1, SLAB), f32).at[:, HALF:HALF + N].set(a0)
    s1 = jnp.zeros((1, SLAB), f32).at[:, HALF:HALF + N].set(a1)
    s2 = jnp.zeros((1, SLAB), f32).at[:, 0:HALF].set(1.0).at[:, HALF:HALF + N].set(a2)
    mask = jnp.zeros((1, SLAB), f32).at[:, 0:HALF].set(1.0)

    b_big = jnp.concatenate([b0, b1, b2, b3, s0, s1, s2, mask], axis=0)  # (8, 128)

    return {
        "w0": W0.astype(weight_dtype),
        "w1": W1.astype(weight_dtype),
        "w2": W2.astype(weight_dtype),
        "w3": W3.astype(weight_dtype),
        "b": b_big,                                   # biases / slopes / mask stay f32
        "std_row": jnp.exp(p["log_std"]).astype(f32),  # (1, OUT) — batch-independent
    }


# ----------------------------------------------------------------------------
# Forward wrapper (jitted; packing is NOT on this path)
# ----------------------------------------------------------------------------
@jax.jit
def actor_critic_forward(x, packed):
    """Returns ((mu, scale), value, std) — Normal dist is represented by (mu, scale)."""
    B, F = x.shape
    Fp = packed["w0"].shape[0]
    OUT = packed["std_row"].shape[1]
    assert F <= Fp

    # Batch tile: up to 4096 rows per step (amortize ~0.35us/step), and >=2 grid steps
    # whenever B > 8 so the "parallel" axis shards across v7x's two TensorCores.
    n_tiles = max(2, pl.cdiv(B, 4096))
    tb = max(8, _round_up(pl.cdiv(B, n_tiles), 8))
    Bp = _round_up(B, tb)
    grid = Bp // tb

    if (Bp, Fp) != (B, F):
        x_p = jnp.zeros((Bp, Fp), x.dtype).at[:B, :F].set(x)
    else:
        x_p = x   # no padding / extra HBM copy when shapes already fit

    cost = pl.CostEstimate(
        flops=2 * Bp * SLAB * (Fp + 3 * SLAB),
        transcendentals=Bp * SLAB,
        bytes_accessed=Bp * Fp * 4 + Bp * SLAB * 4
                       + (Fp + 3 * SLAB) * SLAB * 2 + 8 * SLAB * 4,
    )

    out = pl.pallas_call(
        _make_kernel(packed["w0"].dtype),
        out_shape=jax.ShapeDtypeStruct((Bp, SLAB), jnp.float32),
        grid=(grid,),
        in_specs=[
            pl.BlockSpec((tb, Fp), lambda i: (i, 0)),        # x: blocked on batch
            pl.BlockSpec((Fp, SLAB), lambda i: (0, 0)),      # W0: resident across grid
            pl.BlockSpec((SLAB, SLAB), lambda i: (0, 0)),    # W1
            pl.BlockSpec((SLAB, SLAB), lambda i: (0, 0)),    # W2
            pl.BlockSpec((SLAB, SLAB), lambda i: (0, 0)),    # W3
            pl.BlockSpec((8, SLAB), lambda i: (0, 0)),       # biases / slopes / mask
        ],
        out_specs=pl.BlockSpec((tb, SLAB), lambda i: (i, 0)),
        compiler_params=pltpu.CompilerParams(
            dimension_semantics=("parallel",)),              # shard batch across v7x TCs
        cost_estimate=cost,
    )(x_p, packed["w0"], packed["w1"], packed["w2"], packed["w3"], packed["b"])

    mu = out[:B, 0:OUT]
    value = out[:B, HALF:HALF + 1]

    # std / scale are batch-independent: computed outside the kernel.
    std = jnp.broadcast_to(packed["std_row"], (B, OUT))
    scale = std * 0.1
    # TODO(synk): torch.distributions.Normal object has no Pallas/JAX-array equivalent;
    # we return its parameters (mu, scale) instead.
    return (mu, scale), value, std


# ----------------------------------------------------------------------------
# Init (matches init_weights: W ~ N(0, 0.01), b = 0.1) and pure-JAX reference
# ----------------------------------------------------------------------------
def init_params(key, num_inputs, num_outputs):
    N = NUM_NODES

    def linear(k, fan_in, fan_out):
        # PyTorch stores (out, in); init normal then transpose to (in, out).
        w = 0.01 * jax.random.normal(k, (fan_out, fan_in), dtype=jnp.float32)
        b = jnp.full((1, fan_out), 0.1, dtype=jnp.float32)
        return w.T, b

    ks = jax.random.split(key, 7)
    p = {}
    # actor: Linear(in,N) ReLU | Linear(N,N) ReLU | Linear(N,out) Tanh
    p["a_w0"], p["a_b0"] = linear(ks[0], num_inputs, N)
    p["a_w1"], p["a_b1"] = linear(ks[1], N, N)
    p["a_w2"], p["a_b2"] = linear(ks[2], N, num_outputs)
    # critic: Linear(in,N) PReLU | Linear(N,N) PReLU | Linear(N,N) PReLU | Linear(N,1)
    p["c_w0"], p["c_b0"] = linear(ks[3], num_inputs, N)
    p["c_w1"], p["c_b1"] = linear(ks[4], N, N)
    p["c_w2"], p["c_b2"] = linear(ks[5], N, N)
    p["c_w3"], p["c_b3"] = linear(ks[6], N, 1)
    # PReLU default slope 0.25 (nn.PReLU() single-parameter default)
    p["prelu"] = jnp.full((3,), 0.25, dtype=jnp.float32)
    # log_std = zeros(num_outputs)
    p["log_std"] = jnp.zeros((1, num_outputs), dtype=jnp.float32)
    return p


def reference_forward(x, p):
    def prelu(h, a):
        return jnp.where(h > 0, h, a * h)

    h = prelu(x @ p["c_w0"] + p["c_b0"], p["prelu"][0])
    h = prelu(h @ p["c_w1"] + p["c_b1"], p["prelu"][1])
    h = prelu(h @ p["c_w2"] + p["c_b2"], p["prelu"][2])
    value = h @ p["c_w3"] + p["c_b3"]

    g = jnp.maximum(x @ p["a_w0"] + p["a_b0"], 0.0)
    g = jnp.maximum(g @ p["a_w1"] + p["a_b1"], 0.0)
    mu = jnp.tanh(g @ p["a_w2"] + p["a_b2"])

    std = jnp.broadcast_to(jnp.exp(p["log_std"]), mu.shape)
    return mu, value, std, std * 0.1


if __name__ == "__main__":
    B, NUM_INPUTS, NUM_OUTPUTS = 8, 16, 4

    key = jax.random.PRNGKey(0)
    k_x, k_p = jax.random.split(key)
    x = jax.random.normal(k_x, (B, NUM_INPUTS), dtype=jnp.float32)
    params = init_params(k_p, NUM_INPUTS, NUM_OUTPUTS)

    # pack ONCE (hoisted out of the per-call path), then call the jitted forward
    packed = pack_params(params, NUM_INPUTS)
    packed = jax.block_until_ready(packed)

    (mu, scale), value, std = actor_critic_forward(x, packed)
    jax.block_until_ready((mu, scale, value, std))

    mu_r, value_r, std_r, scale_r = reference_forward(x, params)
    # bf16 MXU path vs f32 reference: allow small absolute deviation
    assert jnp.allclose(mu, mu_r, atol=2e-3), "mu mismatch"
    assert jnp.allclose(value, value_r, atol=2e-3), "value mismatch"
    assert jnp.allclose(std, std_r, atol=1e-6), "std mismatch"
    assert jnp.allclose(scale, scale_r, atol=1e-6), "scale mismatch"

    print("KERNEL_OK")
</pallas_src>

<mosaic_0001>
module attributes {stable_mosaic.version = 11 : i64} {
  func.func @kernel(%arg0: i32, %arg1: memref<8x16xf32, #tpu.memory_space<vmem>>, %arg2: memref<16x128xbf16, #tpu.memory_space<vmem>>, %arg3: memref<128x128xbf16, #tpu.memory_space<vmem>>, %arg4: memref<128x128xbf16, #tpu.memory_space<vmem>>, %arg5: memref<128x128xbf16, #tpu.memory_space<vmem>>, %arg6: memref<8x128xf32, #tpu.memory_space<vmem>>, %arg7: memref<8x128xf32, #tpu.memory_space<vmem>>) attributes {dimension_semantics = [#tpu.dimension_semantics<parallel>], iteration_bounds = array<i64: 1>, scalar_prefetch = 0 : i64, scratch_operands = 0 : i64, tpu.core_type = #tpu.core_type<tc>, window_params = [{transform_indices = @transform_0, window_bounds = array<i64: 8, 16>}, {pipeline_mode = #tpu.pipeline_mode<synchronous>, transform_indices = @transform_1, window_bounds = array<i64: 16, 128>}, {pipeline_mode = #tpu.pipeline_mode<synchronous>, transform_indices = @transform_2, window_bounds = array<i64: 128, 128>}, {pipeline_mode = #tpu.pipeline_mode<synchronous>, transform_indices = @transform_3, window_bounds = array<i64: 128, 128>}, {pipeline_mode = #tpu.pipeline_mode<synchronous>, transform_indices = @transform_4, window_bounds = array<i64: 128, 128>}, {pipeline_mode = #tpu.pipeline_mode<synchronous>, transform_indices = @transform_5, window_bounds = array<i64: 8, 128>}, {transform_indices = @transform_6, window_bounds = array<i64: 8, 128>}]} {
    %c0 = arith.constant 0 : index
    %c0_0 = arith.constant 0 : index
    %0 = vector.load %arg6[%c0, %c0_0] : memref<8x128xf32, #tpu.memory_space<vmem>>, vector<1x128xf32>
    %c1 = arith.constant 1 : index
    %c0_1 = arith.constant 0 : index
    %1 = vector.load %arg6[%c1, %c0_1] : memref<8x128xf32, #tpu.memory_space<vmem>>, vector<1x128xf32>
    %c2 = arith.constant 2 : index
    %c0_2 = arith.constant 0 : index
    %2 = vector.load %arg6[%c2, %c0_2] : memref<8x128xf32, #tpu.memory_space<vmem>>, vector<1x128xf32>
    %c3 = arith.constant 3 : index
    %c0_3 = arith.constant 0 : index
    %3 = vector.load %arg6[%c3, %c0_3] : memref<8x128xf32, #tpu.memory_space<vmem>>, vector<1x128xf32>
    %c4 = arith.constant 4 : index
    %c0_4 = arith.constant 0 : index
    %4 = vector.load %arg6[%c4, %c0_4] : memref<8x128xf32, #tpu.memory_space<vmem>>, vector<1x128xf32>
    %c5 = arith.constant 5 : index
    %c0_5 = arith.constant 0 : index
    %5 = vector.load %arg6[%c5, %c0_5] : memref<8x128xf32, #tpu.memory_space<vmem>>, vector<1x128xf32>
    %c6 = arith.constant 6 : index
    %c0_6 = arith.constant 0 : index
    %6 = vector.load %arg6[%c6, %c0_6] : memref<8x128xf32, #tpu.memory_space<vmem>>, vector<1x128xf32>
    %c7 = arith.constant 7 : index
    %c0_7 = arith.constant 0 : index
    %7 = vector.load %arg6[%c7, %c0_7] : memref<8x128xf32, #tpu.memory_space<vmem>>, vector<1x128xf32>
    %c0_8 = arith.constant 0 : index
    %c0_9 = arith.constant 0 : index
    %8 = vector.load %arg1[%c0_8, %c0_9] : memref<8x16xf32, #tpu.memory_space<vmem>>, vector<8x16xf32>
    %9 = arith.truncf %8 : vector<8x16xf32> to vector<8x16xbf16>
    %c0_10 = arith.constant 0 : index
    %c0_11 = arith.constant 0 : index
    %10 = vector.load %arg2[%c0_10, %c0_11] : memref<16x128xbf16, #tpu.memory_space<vmem>>, vector<16x128xbf16>
    %cst = arith.constant dense<0.000000e+00> : vector<8x128xf32>
    %11 = tpu.matmul %9, %10, %cst {dimension_numbers = #tpu.dot_dimension_numbers<[1], [0], [0], [1], [0, 0, 1, 1], [], []>} : vector<8x16xbf16>, vector<16x128xbf16>, vector<8x128xf32> -> vector<8x128xf32>
    %12 = vector.broadcast %0 : vector<1x128xf32> to vector<8x128xf32>
    %13 = arith.addf %11, %12 : vector<8x128xf32>
    %cst_12 = arith.constant 0.000000e+00 : f32
    %14 = vector.broadcast %cst_12 : f32 to vector<8x128xf32>
    %15 = arith.cmpf ogt, %13, %14 : vector<8x128xf32>
    %16 = vector.broadcast %4 : vector<1x128xf32> to vector<8x128xf32>
    %17 = arith.mulf %16, %13 : vector<8x128xf32>
    %18 = arith.select %15, %13, %17 : vector<8x128xi1>, vector<8x128xf32>
    %19 = arith.truncf %18 : vector<8x128xf32> to vector<8x128xbf16>
    %c0_13 = arith.constant 0 : index
    %c0_14 = arith.constant 0 : index
    %20 = vector.load %arg3[%c0_13, %c0_14] : memref<128x128xbf16, #tpu.memory_space<vmem>>, vector<128x128xbf16>
    %cst_15 = arith.constant dense<0.000000e+00> : vector<8x128xf32>
    %21 = tpu.matmul %19, %20, %cst_15 {dimension_numbers = #tpu.dot_dimension_numbers<[1], [0], [0], [1], [0, 0, 1, 1], [], []>} : vector<8x128xbf16>, vector<128x128xbf16>, vector<8x128xf32> -> vector<8x128xf32>
    %22 = vector.broadcast %1 : vector<1x128xf32> to vector<8x128xf32>
    %23 = arith.addf %21, %22 : vector<8x128xf32>
    %cst_16 = arith.constant 0.000000e+00 : f32
    %24 = vector.broadcast %cst_16 : f32 to vector<8x128xf32>
    %25 = arith.cmpf ogt, %23, %24 : vector<8x128xf32>
    %26 = vector.broadcast %5 : vector<1x128xf32> to vector<8x128xf32>
    %27 = arith.mulf %26, %23 : vector<8x128xf32>
    %28 = arith.select %25, %23, %27 : vector<8x128xi1>, vector<8x128xf32>
    %29 = arith.truncf %28 : vector<8x128xf32> to vector<8x128xbf16>
    %c0_17 = arith.constant 0 : index
    %c0_18 = arith.constant 0 : index
    %30 = vector.load %arg4[%c0_17, %c0_18] : memref<128x128xbf16, #tpu.memory_space<vmem>>, vector<128x128xbf16>
    %cst_19 = arith.constant dense<0.000000e+00> : vector<8x128xf32>
    %31 = tpu.matmul %29, %30, %cst_19 {dimension_numbers = #tpu.dot_dimension_numbers<[1], [0], [0], [1], [0, 0, 1, 1], [], []>} : vector<8x128xbf16>, vector<128x128xbf16>, vector<8x128xf32> -> vector<8x128xf32>
    %32 = vector.broadcast %2 : vector<1x128xf32> to vector<8x128xf32>
    %33 = arith.addf %31, %32 : vector<8x128xf32>
    %cst_20 = arith.constant 0.000000e+00 : f32
    %34 = vector.broadcast %cst_20 : f32 to vector<8x128xf32>
    %35 = arith.cmpf ogt, %33, %34 : vector<8x128xf32>
    %36 = vector.broadcast %6 : vector<1x128xf32> to vector<8x128xf32>
    %37 = arith.mulf %36, %33 : vector<8x128xf32>
    %38 = arith.select %35, %33, %37 : vector<8x128xi1>, vector<8x128xf32>
    %39 = arith.truncf %38 : vector<8x128xf32> to vector<8x128xbf16>
    %c0_21 = arith.constant 0 : index
    %c0_22 = arith.constant 0 : index
    %40 = vector.load %arg5[%c0_21, %c0_22] : memref<128x128xbf16, #tpu.memory_space<vmem>>, vector<128x128xbf16>
    %cst_23 = arith.constant dense<0.000000e+00> : vector<8x128xf32>
    %41 = tpu.matmul %39, %40, %cst_23 {dimension_numbers = #tpu.dot_dimension_numbers<[1], [0], [0], [1], [0, 0, 1, 1], [], []>} : vector<8x128xbf16>, vector<128x128xbf16>, vector<8x128xf32> -> vector<8x128xf32>
    %42 = vector.broadcast %3 : vector<1x128xf32> to vector<8x128xf32>
    %43 = arith.addf %41, %42 : vector<8x128xf32>
    %44 = math.tanh %38 : vector<8x128xf32>
    %45 = vector.broadcast %7 : vector<1x128xf32> to vector<8x128xf32>
    %46 = arith.mulf %45, %44 : vector<8x128xf32>
    %47 = arith.addf %46, %43 : vector<8x128xf32>
    %c0_24 = arith.constant 0 : index
    %c0_25 = arith.constant 0 : index
    %48 = vector.load %arg7[%c0_24, %c0_25] : memref<8x128xf32, #tpu.memory_space<vmem>>, vector<8x128xf32>
    tpu.vector_store %arg7[%c0_24, %c0_25], %47 {strides = array<i32>} : memref<8x128xf32, #tpu.memory_space<vmem>>, vector<8x128xf32>,
    return
  }
  func.func @transform_0(%arg0: i32) -> (i32, i32) {
    %c0_i32 = arith.constant 0 : i32
    %c0_i32_0 = arith.constant 0 : i32
    return %arg0, %c0_i32 : i32, i32
  }
  func.func @transform_1(%arg0: i32) -> (i32, i32) {
    %c0_i32 = arith.constant 0 : i32
    %c0_i32_0 = arith.constant 0 : i32
    %c0_i32_1 = arith.constant 0 : i32
    return %c0_i32, %c0_i32_0 : i32, i32
  }
  func.func @transform_2(%arg0: i32) -> (i32, i32) {
    %c0_i32 = arith.constant 0 : i32
    %c0_i32_0 = arith.constant 0 : i32
    %c0_i32_1 = arith.constant 0 : i32
    return %c0_i32, %c0_i32_0 : i32, i32
  }
  func.func @transform_3(%arg0: i32) -> (i32, i32) {
    %c0_i32 = arith.constant 0 : i32
    %c0_i32_0 = arith.constant 0 : i32
    %c0_i32_1 = arith.constant 0 : i32
    return %c0_i32, %c0_i32_0 : i32, i32
  }
  func.func @transform_4(%arg0: i32) -> (i32, i32) {
    %c0_i32 = arith.constant 0 : i32
    %c0_i32_0 = arith.constant 0 : i32
    %c0_i32_1 = arith.constant 0 : i32
    return %c0_i32, %c0_i32_0 : i32, i32
  }
  func.func @transform_5(%arg0: i32) -> (i32, i32) {
    %c0_i32 = arith.constant 0 : i32
    %c0_i32_0 = arith.constant 0 : i32
    %c0_i32_1 = arith.constant 0 : i32
    return %c0_i32, %c0_i32_0 : i32, i32
  }
  func.func @transform_6(%arg0: i32) -> (i32, i32) {
    %c0_i32 = arith.constant 0 : i32
    %c0_i32_0 = arith.constant 0 : i32
    return %arg0, %c0_i32 : i32, i32
  }
}

</mosaic_0001>

<bundles_post_ra>
// kernel: actor_critic_forward.1
= control target key start
LH: loop header
LB: loop body
LE: loop exit
PB: predicated region body
PF: predicated region fallthrough
CT: control target
= control target key end

     0   :  { %11 = vsyncpa [#allocation3], 0  ;;  %s784_s0 = inlined_call_operand.hbm [shape: f32[8,16], index: 0, kind: input, shape index: {}]   ;;  %s785_s1 = inlined_call_operand.hbm [shape: bf16[16,128], index: 1, kind: input, shape index: {}]   ;;  %s786_s2 = inlined_call_operand.hbm [shape: bf16[128,128], index: 2, kind: input, shape index: {}]   ;;  %s787_s3 = inlined_call_operand.hbm [shape: bf16[128,128], index: 3, kind: input, shape index: {}]   ;;  %s788_s4 = inlined_call_operand.hbm [shape: bf16[128,128], index: 4, kind: input, shape index: {}]   ;;  %s789_s5 = inlined_call_operand.hbm [shape: f32[8,128], index: 5, kind: input, shape index: {}]   ;;  %s790_s6 = inlined_call_operand.vmem [shape: f32[8,128], index: 6, kind: output, shape index: {}]  }
   0x1   :  { %12 = vsyncpa [#allocation5], 0 }
   0x2   :  { %13 = vsyncpa [#allocation8], 0  ;;  %s30_s23 = sshll.u32 %s785_s1, 4  ;;  %s31_s23 = int_to_ptr.hbm [resolvable:$true] %s30_s23 }
   0x3   :  { %14 = vsyncpa [#allocation11], 0  ;;  %s708_s24 = smov [#allocation4]   ;;  %s56_s28 = sshll.u32 %s787_s3, 4  ;;  %s57_s28 = int_to_ptr.hbm [resolvable:$true] %s56_s28 }
   0x4   :  { %s32_s25 = sshll.u32 %s708_s24, 4  ;;  %s709_s29 = smov 64   ;;  %s33_s25 = int_to_ptr.vmem [resolvable:$true] %s32_s25 }
   0x5   :  { %s710_s30 = smov 4   ;;  %s711_s7 = smov [#allocation7]  }
   0x6   :  { %38 = dma.hbm_to_vmem [thread:$0]  %s31_s23, 128, %s33_s25, [#allocation5], %s709_s29, %s709_s29, %s710_s30  }
   0x7   :  { %s58_s8 = sshll.u32 %s711_s7, 4  ;;  %s20_s10 = sshll.u32 %s784_s0, 4  ;;  %s59_s8 = int_to_ptr.vmem [resolvable:$true] %s58_s8  ;;  %s21_s10 = int_to_ptr.hbm [resolvable:$true] %s20_s10 }
   0x8   :  { %64 = dma.hbm_to_vmem [thread:$0]  %s57_s28, 1024, %s59_s8, [#allocation8], %s709_s29, %s709_s29, %s710_s30  }
   0x9   :  { %s43_s12 = sshll.u32 %s786_s2, 4  ;;  %s712_s13 = smov [#allocation2]   ;;  %s44_s12 = int_to_ptr.hbm [resolvable:$true] %s43_s12 }
   0xa   :  { %s22_s14 = sshll.u32 %s712_s13, 4  ;;  %s713_s15 = smov [#allocation6]   ;;  %s23_s14 = int_to_ptr.vmem [resolvable:$true] %s22_s14 }
   0xb   :  { %25 = dma.hbm_to_vmem [thread:$0]  %s21_s10, 128, %s23_s14, [#allocation3]  }
   0xc   :  { %s45_s16 = sshll.u32 %s713_s15, 4  ;;  %s69_s0 = sshll.u32 %s788_s4, 4  ;;  %s46_s16 = int_to_ptr.vmem [resolvable:$true] %s45_s16  ;;  %s70_s0 = int_to_ptr.hbm [resolvable:$true] %s69_s0 }
   0xd   :  { %51 = dma.hbm_to_vmem [thread:$0]  %s44_s12, 1024, %s46_s16, [#allocation5], %s709_s29, %s709_s29, %s710_s30  }
   0xe   :  { %s83_s2 = sshll.u32 %s789_s5, 4  ;;  %s714_s21 = smov [#allocation9]   ;;  %s84_s2 = int_to_ptr.hbm [resolvable:$true] %s83_s2 }
   0xf   :  { %s71_s22 = sshll.u32 %s714_s21, 4  ;;  %s715_s23 = smov [#allocation10]   ;;  %s72_s22 = int_to_ptr.vmem [resolvable:$true] %s71_s22 }
  0x10   :  { %77 = dma.hbm_to_vmem [thread:$0]  %s70_s0, 1024, %s72_s22, [#allocation8], %s709_s29, %s709_s29, %s710_s30  }
  0x11   :  { %s85_s4 = sshll.u32 %s715_s23, 4  ;;  %s86_s4 = int_to_ptr.vmem [resolvable:$true] %s85_s4 }
  0x12   :  { %88 = dma.hbm_to_vmem [thread:$0]  %s84_s2, 128, %s86_s4, [#allocation11]  }
  0x13   :  { %700 = dma.done.wait [#allocation3], 128  }
  0x14   :  { %701 = vsyncadd [#allocation3], 4294967168 }
  0x15   :  { %702 = dma.done.wait [#allocation5], 1152  }
  0x16   :  { %703 = vsyncadd [#allocation5], 4294966144 }
  0x17   :  { %704 = dma.done.wait [#allocation8], 2048  }
  0x18   :  { %705 = vsyncadd [#allocation8], 4294965248 }
  0x19   :  { %706 = dma.done.wait [#allocation11], 128  }
  0x1a   :  { %707 = vsyncadd [#allocation11], 4294967168  ;;  %v513_v0 = vld [vmem:[#allocation4] sm:$0xff]  ;;  %v122_v1 = vld [vmem:[#allocation2] sm:$0xff]  ;;  %vm133_vm0 = vcmask 130048  }
  0x1b   :  { %v521_v2 = vld [vmem:[#allocation6 + $0x38] sm:$0xff]  ;;  %v123_v3 = vpack.c.bf16 %v122_v1, %v122_v1  ;;  %144 = vmatpush.bf16.msra.mxu0 %v513_v0  ;;  %v520_v4 = vld [vmem:[#allocation6 + $0x30] sm:$0xff]  ;;  %v519_v5 = vld [vmem:[#allocation6 + $0x28] sm:$0xff] }
  0x1c   :  { %220 = vmatpush.bf16.msra.mxu1 %v521_v2  ;;  %v518_v6 = vld [vmem:[#allocation6 + $0x20] sm:$0xff]  ;;  %v517_v7 = vld [vmem:[#allocation6 + $0x18] sm:$0xff]  ;;  %v516_v8 = vld [vmem:[#allocation6 + $0x10] sm:$0xff] }
  0x1d   :  { %v515_v9 = vld [vmem:[#allocation6 + $0x8] sm:$0xff]  ;;  %v514_v10 = vld [vmem:[#allocation6] sm:$0xff]  ;;  %v529_v11 = vld [vmem:[#allocation7 + $0x38] sm:$0xff] }
  0x1e   :  { %416 = vmatmul.msk.bf16.vlgmr.msra.gmra.mxu0 %vm133_vm0, %v123_v3  ;;  %303 = vmatpush.bf16.msra.mxu2 %v529_v11  ;;  %v528_v12 = vld [vmem:[#allocation7 + $0x30] sm:$0xff]  ;;  %v527_v13 = vld [vmem:[#allocation7 + $0x28] sm:$0xff]  ;;  %v526_v14 = vld [vmem:[#allocation7 + $0x20] sm:$0xff] }
  0x1f   :  { %v525_v15 = vld [vmem:[#allocation7 + $0x18] sm:$0xff]  ;;  %v524_v16 = vld [vmem:[#allocation7 + $0x10] sm:$0xff]  ;;  %v546_v17 = vld [vmem:[#allocation10] ss:$0 sm:$0xff] }
  0x20   :  { %221 = vmatpush.bf16.msra.mxu1 %v520_v4  ;;  %v547_v18 = vld [vmem:[#allocation10 + $0x4] ss:$0 sm:$0xff]  ;;  %v523_v25 = vld [vmem:[#allocation7 + $0x8] sm:$0xff]  ;;  %v537_v27 = vld [vmem:[#allocation9 + $0x38] sm:$0xff] }
  0x21   :  { %v522_v26 = vld [vmem:[#allocation7] sm:$0xff]  ;;  %386 = vmatpush.bf16.msra.mxu3 %v537_v27  ;;  %v536_v28 = vld [vmem:[#allocation9 + $0x30] sm:$0xff]  ;;  %v535_v29 = vld [vmem:[#allocation9 + $0x28] sm:$0xff] }
  0x22   :  { %304 = vmatpush.bf16.msra.mxu2 %v528_v12  ;;  %v534_v30 = vld [vmem:[#allocation9 + $0x20] sm:$0xff]  ;;  %v533_v31 = vld [vmem:[#allocation9 + $0x18] sm:$0xff]  ;;  %v532_v32 = vld [vmem:[#allocation9 + $0x10] sm:$0xff] }
  0x23   :  { %v548_v33 = vld [vmem:[#allocation10 + $0x1] ss:$0 sm:$0xff]  ;;  %v549_v34 = vld [vmem:[#allocation10 + $0x5] ss:$0 sm:$0xff]  ;;  %v531_v41 = vld [vmem:[#allocation9 + $0x8] sm:$0xff] }
  0x24   :  { %222 = vmatpush.bf16.msra.mxu1 %v519_v5  ;;  %v530_v42 = vld [vmem:[#allocation9] sm:$0xff] }
  0x25   :  { %387 = vmatpush.bf16.msra.mxu3 %v536_v28  ;;  %v550_v43 = vld [vmem:[#allocation10 + $0x2] ss:$0 sm:$0xff]  ;;  %v551_v44 = vld [vmem:[#allocation10 + $0x6] ss:$0 sm:$0xff]  ;;  %v552_v51 = vld [vmem:[#allocation10 + $0x3] ss:$0 sm:$0xff] }
  0x26   :  { %305 = vmatpush.bf16.msra.mxu2 %v527_v13  ;;  %v553_v52 = vld [vmem:[#allocation10 + $0x7] ss:$0 sm:$0xff] }
  0x28   :  { %223 = vmatpush.bf16.msra.mxu1 %v518_v6 }
  0x29   :  { %388 = vmatpush.bf16.msra.mxu3 %v535_v29 }
  0x2a   :  { %306 = vmatpush.bf16.msra.mxu2 %v526_v14 }
  0x2c   :  { %224 = vmatpush.bf16.msra.mxu1 %v517_v7 }
  0x2d   :  { %389 = vmatpush.bf16.msra.mxu3 %v534_v30 }
  0x2e   :  { %307 = vmatpush.bf16.msra.mxu2 %v525_v15 }
  0x30   :  { %225 = vmatpush.bf16.msra.mxu1 %v516_v8 }
  0x31   :  { %390 = vmatpush.bf16.msra.mxu3 %v533_v31 }
  0x32   :  { %308 = vmatpush.bf16.msra.mxu2 %v524_v16 }
  0x34   :  { %226 = vmatpush.bf16.msra.mxu1 %v515_v9 }
  0x35   :  { %391 = vmatpush.bf16.msra.mxu3 %v532_v32 }
  0x36   :  { %309 = vmatpush.bf16.msra.mxu2 %v523_v25 }
  0x38   :  { %227 = vmatpush.bf16.msra.mxu1 %v514_v10 }
  0x39   :  { %392 = vmatpush.bf16.msra.mxu3 %v531_v41 }
  0x3a   :  { %310 = vmatpush.bf16.msra.mxu2 %v522_v26 }
  0x3d   :  { %393 = vmatpush.bf16.msra.mxu3 %v530_v42 }
  0x9b   :  { %v146_v19 = vpop.f32.mrf.mxu0 }
  0x9c   :  { %v147_v20 = vadd.f32 %v546_v17, %v146_v19 }
  0x9e   :  { %v152_v21 = vmul.f32 %v547_v18, %v147_v20  ;;  %vm150_vm1 = vcmp.gt.f32.partialorder %v147_v20, 0.0 }
  0xa0   :  { %v153_v22 = vsel %vm150_vm1, %v147_v20, %v152_v21 }
  0xa1   :  { %v154_v23 = vpack.c.bf16 %v153_v22, %v153_v22 }
  0xa3   :  { %v148_v24 = vpop.f32.mrf.mxu0  ;;  %228 = vmatmul.bf16.vlgmr.msra.gmra.mxu1 %v154_v23 }
 0x120   :  { %v229_v35 = vpop.f32.mrf.mxu1 }
 0x121   :  { %v230_v36 = vadd.f32 %v548_v33, %v229_v35 }
 0x123   :  { %v235_v37 = vmul.f32 %v549_v34, %v230_v36  ;;  %vm233_vm2 = vcmp.gt.f32.partialorder %v230_v36, 0.0 }
 0x125   :  { %v236_v38 = vsel %vm233_vm2, %v230_v36, %v235_v37 }
 0x126   :  { %v237_v39 = vpack.c.bf16 %v236_v38, %v236_v38 }
 0x128   :  { %v231_v40 = vpop.f32.mrf.mxu1  ;;  %311 = vmatmul.bf16.vlgmr.msra.gmra.mxu2 %v237_v39 }
 0x1ab   :  { %v312_v45 = vpop.f32.mrf.mxu2 }
 0x1ac   :  { %v313_v46 = vadd.f32 %v550_v43, %v312_v45 }
 0x1ae   :  { %v318_v47 = vmul.f32 %v551_v44, %v313_v46  ;;  %vm316_vm3 = vcmp.gt.f32.partialorder %v313_v46, 0.0 }
 0x1b0   :  { %v319_v48 = vsel %vm316_vm3, %v313_v46, %v318_v47 }
 0x1b1   :  { %v320_v49 = vpack.c.bf16 %v319_v48, %v319_v48  ;;  %554 = vtanh.f32 %v319_v48 }
 0x1b3   :  { %v314_v50 = vpop.f32.mrf.mxu2  ;;  %394 = vmatmul.bf16.vlgmr.msra.gmra.mxu3 %v320_v49 }
 0x1b7   :  { %v555_v53 = vpop.eup %554 }
 0x1b8   :  { %v401_v56 = vmul.f32 %v555_v53, %v553_v52 }
 0x236   :  { %v395_v54 = vpop.f32.mrf.mxu3 }
 0x237   :  { %v396_v55 = vadd.f32 %v552_v51, %v395_v54 }
 0x239   :  { %v402_v57 = vadd.f32 %v401_v56, %v396_v55 }
 0x23b   :  { %403 = vst [vmem:[%s790_s6] sm:$0xff] %v402_v57 }
 0x23e   :  { %v397_v58 = vpop.f32.mrf.mxu3 }
 0x23f   :  { %408 = vsyncpa [#allocation3], 1 }
 0x240   :  { %409 = vsyncpa [#allocation5], 1 }
 0x241   :  { %410 = vsyncpa [#allocation8], 1 }
 0x242   :  { %411 = vsyncpa [#allocation11], 1 }

</bundles_post_ra>
